<compile_context>
chip_gen: v7x
topology: tpu7x:2x2x1
jax: 0.10.0
libtpu: 0.0.40
codegen_flags: <defaults>
</compile_context>

<pallas_src>
import functools

import jax
import jax.numpy as jnp
from jax.experimental import pallas as pl
from jax.experimental.pallas import tpu as pltpu

_LEAKY_SLOPE = 0.01   # PyTorch F.leaky_relu default negative_slope
_LANES = 128


def _round_up(n, m):
    return (n + m - 1) // m * m


def _cdiv(a, b):
    return (a + b - 1) // b


def _critic_kernel(x_ref, w_in_ref, w_hid_ref, misc_ref, out_ref):
    # x_ref:     (TB, S)            bf16 activations for this batch tile
    # w_in_ref:  (S, H)             bf16 fci weight (x @ W layout)
    # w_hid_ref: (2, H, H)          bf16 fc1 / fc2 weights
    # misc_ref:  (8, H)             f32 rows [bi, b1, b2, wf, bf, 0, 0, 0]
    # out_ref:   (TB//128, 128)     f32, lane-major: out[r, c] = row 128*r + c
    x = x_ref[...]                       # bf16
    misc = misc_ref[...]                 # f32
    bi = misc[0:1, :]
    b1 = misc[1:2, :]
    b2 = misc[2:3, :]
    wf = misc[3:4, :]                    # fcf weight as a lane row (1, H)
    bf = misc[4:5, 0:1]                  # fcf bias (1, 1)

    f32 = jnp.float32
    bf16 = jnp.bfloat16

    # fci: Linear, no activation (bf16 MXU, f32 accumulate, f32 epilogue)
    h = jnp.dot(x, w_in_ref[...], preferred_element_type=f32) + bi
    # fc1 + ReLU
    h = jnp.dot(h.astype(bf16), w_hid_ref[0], preferred_element_type=f32) + b1
    h = jnp.maximum(h, 0.0)
    # fc2 + LeakyReLU  (max(x, a*x) == leaky_relu for 0 < a < 1)
    h = jnp.dot(h.astype(bf16), w_hid_ref[1], preferred_element_type=f32) + b2
    h = jnp.maximum(h, _LEAKY_SLOPE * h)

    # fcf: Linear(H -> 1) head as VPU multiply + XLU transpose + sublane
    # reduce, emitting a lane-major row per 128 batch rows (MXU stays free,
    # store is a full unmasked tile, 4 B written per sample).
    tb = h.shape[0]
    rows = []
    for r in range(tb // _LANES):                         # small static loop
        blk = h[r * _LANES:(r + 1) * _LANES, :] * wf      # (128, H) f32
        blk_t = blk.T                                     # (H, 128) XLU transpose
        rows.append(jnp.sum(blk_t, axis=0, keepdims=True))  # (1, 128)
    v = jnp.concatenate(rows, axis=0) + bf                # (TB//128, 128)
    out_ref[...] = v.astype(out_ref.dtype)


def pack_params(p):
    """Pack the 8 PyTorch-style params into 3 kernel operands (pack once).

    Matmul weights go to bf16 (MXU-native); biases / fcf row stay f32.
    hidden_dim is zero-padded to a multiple of 128 lanes; padded columns stay
    exactly zero through the whole network so results are unchanged.
    """
    H = p["w1"].shape[0]
    Hp = _round_up(H, _LANES)
    ph = Hp - H

    def pad_cols(w):
        return jnp.pad(w, ((0, 0), (0, ph)))

    w_in = pad_cols(p["wi"]).astype(jnp.bfloat16)                       # (S, Hp)
    w1 = jnp.pad(p["w1"], ((0, ph), (0, ph)))
    w2 = jnp.pad(p["w2"], ((0, ph), (0, ph)))
    w_hid = jnp.stack([w1, w2]).astype(jnp.bfloat16)                    # (2, Hp, Hp)
    misc = jnp.concatenate(
        [
            pad_cols(p["bi"]),                                          # row 0
            pad_cols(p["b1"]),                                          # row 1
            pad_cols(p["b2"]),                                          # row 2
            pad_cols(p["wf"].reshape(1, H)),                            # row 3
            jnp.broadcast_to(p["bf"].reshape(1, 1), (1, Hp)),           # row 4
            jnp.zeros((3, Hp), jnp.float32),                            # pad to 8
        ],
        axis=0,
    ).astype(jnp.float32)                                               # (8, Hp)
    return w_in, w_hid, misc


@functools.partial(jax.jit, static_argnames=("tile_b",))
def critic_forward(state, w_in, w_hid, misc, *, tile_b=512):
    """state: (B, S) f32. Packed params from pack_params(). Returns (B, 1) f32."""
    B, S = state.shape
    Hp = w_in.shape[1]

    tile_b = max(_LANES, _round_up(tile_b, _LANES))
    b_ceil = _round_up(B, _LANES)
    # >= 2 grid steps whenever possible so ("parallel",) shards across both
    # v7x TensorCores; harmless on v5e / v6e (single TC).
    tb = max(_LANES, min(tile_b, _round_up(_cdiv(b_ceil, 2), _LANES)))
    num_tiles = _cdiv(B, tb)
    rows_per_tile = tb // _LANES

    # Pad the batch so every block is full (no partial / masked blocks, no
    # garbage rows); padded rows are zeros and get sliced off below.
    b_pad = num_tiles * tb
    x = state.astype(jnp.bfloat16)
    if b_pad != B:
        x = jnp.pad(x, ((0, b_pad - B), (0, 0)))

    flops = 2 * b_pad * (S * Hp + 2 * Hp * Hp + Hp)
    bytes_accessed = (2 * (x.size + w_in.size + w_hid.size)   # bf16 operands
                      + 4 * misc.size + 4 * b_pad)            # f32 misc + output

    # Streaming operands (x, out) double-buffer; weights are single-buffered.
    vmem_est = (2 * (tb * S * 2 + tb * 4)
                + S * Hp * 2 + 2 * Hp * Hp * 2 + 8 * Hp * 4
                + 6 * tb * Hp * 4)          # headroom for live f32 intermediates
    vmem_limit = min(48 << 20, max(32 << 20, vmem_est))

    out = pl.pallas_call(
        _critic_kernel,
        out_shape=jax.ShapeDtypeStruct((num_tiles, rows_per_tile, _LANES),
                                       jnp.float32),
        grid=(num_tiles,),
        in_specs=[
            # activations stream over the batch grid
            pl.BlockSpec((tb, S), lambda i: (i, 0)),
            # weights / biases stay VMEM-resident across tiles; constant index
            # maps + single buffering avoid redundant copies and VMEM waste.
            pl.BlockSpec((S, Hp), lambda i: (0, 0),
                         pipeline_mode=pl.Buffered(1)),
            pl.BlockSpec((2, Hp, Hp), lambda i: (0, 0, 0),
                         pipeline_mode=pl.Buffered(1)),
            pl.BlockSpec((8, Hp), lambda i: (0, 0),
                         pipeline_mode=pl.Buffered(1)),
        ],
        out_specs=pl.BlockSpec((None, rows_per_tile, _LANES),
                               lambda i: (i, 0, 0)),
        compiler_params=pltpu.CompilerParams(
            dimension_semantics=("parallel",),
            vmem_limit_bytes=vmem_limit),
        cost_estimate=pl.CostEstimate(
            flops=flops, transcendentals=0, bytes_accessed=bytes_accessed),
    )(x, w_in, w_hid, misc)

    # out[i, r, c] = value for sample i*tb + r*128 + c  ->  (B, 1)
    return out.reshape(-1)[:B].reshape(B, 1)


def _init_linear(key, fan_in, fan_out):
    """PyTorch-style uniform(-1/sqrt(fan_in), 1/sqrt(fan_in)).

    Weight returned already transposed to (fan_in, fan_out); bias (1, fan_out).
    """
    kw, kb = jax.random.split(key)
    bound = 1.0 / jnp.sqrt(jnp.float32(fan_in))
    w = jax.random.uniform(kw, (fan_in, fan_out), jnp.float32, -bound, bound)
    b = jax.random.uniform(kb, (1, fan_out), jnp.float32, -bound, bound)
    return w, b


def make_params(key, state_dim, hidden_dim):
    k0, k1, k2, k3 = jax.random.split(key, 4)
    wi, bi = _init_linear(k0, state_dim, hidden_dim)
    w1, b1 = _init_linear(k1, hidden_dim, hidden_dim)
    w2, b2 = _init_linear(k2, hidden_dim, hidden_dim)
    wf, bf = _init_linear(k3, hidden_dim, 1)
    return dict(wi=wi, bi=bi, w1=w1, b1=b1, w2=w2, b2=b2, wf=wf, bf=bf)


def critic_reference(state, p, quantize=False):
    """Pure-JAX reference. quantize=True mirrors the kernel's bf16 matmuls."""
    def mm(a, w):
        if quantize:
            a, w = a.astype(jnp.bfloat16), w.astype(jnp.bfloat16)
        return jnp.dot(a, w, preferred_element_type=jnp.float32)

    h = mm(state, p["wi"]) + p["bi"]
    h = jnp.maximum(mm(h, p["w1"]) + p["b1"], 0.0)
    z = mm(h, p["w2"]) + p["b2"]
    h = jnp.maximum(z, _LEAKY_SLOPE * z)
    return h @ p["wf"] + p["bf"]


if __name__ == "__main__":
    batch, state_dim, hidden_dim = 8, 4, 32

    key = jax.random.PRNGKey(0)
    kp, kx = jax.random.split(key)
    params = make_params(kp, state_dim, hidden_dim)
    state = jax.random.normal(kx, (batch, state_dim), jnp.float32)

    packed = pack_params(params)        # pack once, reuse across rollout calls
    value = critic_forward(state, *packed)
    value = jax.block_until_ready(value)
    assert value.shape == (batch, 1), value.shape

    # Tight check vs. a reference that mirrors the kernel's bf16 matmuls.
    ref_q = critic_reference(state, params, quantize=True)
    assert jnp.allclose(value, ref_q, atol=2e-4, rtol=2e-4), (value, ref_q)
    # Loose sanity check vs. the pure-f32 PyTorch-equivalent math.
    ref_f32 = critic_reference(state, params, quantize=False)
    assert jnp.allclose(value, ref_f32, atol=5e-2, rtol=5e-2), (value, ref_f32)

    print("KERNEL_OK")
</pallas_src>

<mosaic_0001>
module attributes {stable_mosaic.version = 11 : i64} {
  func.func @_critic_kernel(%arg0: i32, %arg1: memref<128x4xbf16, #tpu.memory_space<vmem>>, %arg2: memref<4x128xbf16, #tpu.memory_space<vmem>>, %arg3: memref<2x128x128xbf16, #tpu.memory_space<vmem>>, %arg4: memref<8x128xf32, #tpu.memory_space<vmem>>, %arg5: memref<1x1x128xf32, #tpu.memory_space<vmem>>) attributes {dimension_semantics = [#tpu.dimension_semantics<parallel>], iteration_bounds = array<i64: 1>, scalar_prefetch = 0 : i64, scratch_operands = 0 : i64, tpu.core_type = #tpu.core_type<tc>, window_params = [{transform_indices = @transform_0, window_bounds = array<i64: 128, 4>}, {pipeline_mode = #tpu.pipeline_mode<synchronous>, transform_indices = @transform_1, window_bounds = array<i64: 4, 128>}, {pipeline_mode = #tpu.pipeline_mode<synchronous>, transform_indices = @transform_2, window_bounds = array<i64: 2, 128, 128>}, {pipeline_mode = #tpu.pipeline_mode<synchronous>, transform_indices = @transform_3, window_bounds = array<i64: 8, 128>}, {transform_indices = @transform_4, window_bounds = array<i64: 1, 1, 128>}]} {
    %c0 = arith.constant 0 : index
    %c0_0 = arith.constant 0 : index
    %0 = vector.load %arg1[%c0, %c0_0] : memref<128x4xbf16, #tpu.memory_space<vmem>>, vector<128x4xbf16>
    %c0_1 = arith.constant 0 : index
    %c0_2 = arith.constant 0 : index
    %1 = vector.load %arg4[%c0_1, %c0_2] : memref<8x128xf32, #tpu.memory_space<vmem>>, vector<8x128xf32>
    %2 = vector.extract_strided_slice %1 {offsets = [0, 0], sizes = [1, 128], strides = [1, 1]} : vector<8x128xf32> to vector<1x128xf32>
    %3 = vector.extract_strided_slice %1 {offsets = [1, 0], sizes = [1, 128], strides = [1, 1]} : vector<8x128xf32> to vector<1x128xf32>
    %4 = vector.extract_strided_slice %1 {offsets = [2, 0], sizes = [1, 128], strides = [1, 1]} : vector<8x128xf32> to vector<1x128xf32>
    %5 = vector.extract_strided_slice %1 {offsets = [3, 0], sizes = [1, 128], strides = [1, 1]} : vector<8x128xf32> to vector<1x128xf32>
    %6 = vector.extract_strided_slice %1 {offsets = [4, 0], sizes = [1, 1], strides = [1, 1]} : vector<8x128xf32> to vector<1x1xf32>
    %c0_3 = arith.constant 0 : index
    %c0_4 = arith.constant 0 : index
    %7 = vector.load %arg2[%c0_3, %c0_4] : memref<4x128xbf16, #tpu.memory_space<vmem>>, vector<4x128xbf16>
    %cst = arith.constant dense<0.000000e+00> : vector<128x128xf32>
    %8 = tpu.matmul %0, %7, %cst {dimension_numbers = #tpu.dot_dimension_numbers<[1], [0], [0], [1], [0, 0, 1, 1], [], []>} : vector<128x4xbf16>, vector<4x128xbf16>, vector<128x128xf32> -> vector<128x128xf32>
    %9 = vector.broadcast %2 : vector<1x128xf32> to vector<128x128xf32>
    %10 = arith.addf %8, %9 : vector<128x128xf32>
    %11 = arith.truncf %10 : vector<128x128xf32> to vector<128x128xbf16>
    %c0_5 = arith.constant 0 : index
    %c0_6 = arith.constant 0 : index
    %c0_7 = arith.constant 0 : index
    %12 = vector.load %arg3[%c0_5, %c0_6, %c0_7] : memref<2x128x128xbf16, #tpu.memory_space<vmem>>, vector<1x128x128xbf16>
    %13 = vector.shape_cast %12 : vector<1x128x128xbf16> to vector<128x128xbf16>
    %cst_8 = arith.constant dense<0.000000e+00> : vector<128x128xf32>
    %14 = tpu.matmul %11, %13, %cst_8 {dimension_numbers = #tpu.dot_dimension_numbers<[1], [0], [0], [1], [0, 0, 1, 1], [], []>} : vector<128x128xbf16>, vector<128x128xbf16>, vector<128x128xf32> -> vector<128x128xf32>
    %15 = vector.broadcast %3 : vector<1x128xf32> to vector<128x128xf32>
    %16 = arith.addf %14, %15 : vector<128x128xf32>
    %cst_9 = arith.constant 0.000000e+00 : f32
    %17 = vector.broadcast %cst_9 : f32 to vector<128x128xf32>
    %18 = arith.maximumf %16, %17 : vector<128x128xf32>
    %19 = arith.truncf %18 : vector<128x128xf32> to vector<128x128xbf16>
    %c1 = arith.constant 1 : index
    %c0_10 = arith.constant 0 : index
    %c0_11 = arith.constant 0 : index
    %20 = vector.load %arg3[%c1, %c0_10, %c0_11] : memref<2x128x128xbf16, #tpu.memory_space<vmem>>, vector<1x128x128xbf16>
    %21 = vector.shape_cast %20 : vector<1x128x128xbf16> to vector<128x128xbf16>
    %cst_12 = arith.constant dense<0.000000e+00> : vector<128x128xf32>
    %22 = tpu.matmul %19, %21, %cst_12 {dimension_numbers = #tpu.dot_dimension_numbers<[1], [0], [0], [1], [0, 0, 1, 1], [], []>} : vector<128x128xbf16>, vector<128x128xbf16>, vector<128x128xf32> -> vector<128x128xf32>
    %23 = vector.broadcast %4 : vector<1x128xf32> to vector<128x128xf32>
    %24 = arith.addf %22, %23 : vector<128x128xf32>
    %cst_13 = arith.constant 0.00999999977 : f32
    %25 = vector.broadcast %cst_13 : f32 to vector<128x128xf32>
    %26 = arith.mulf %25, %24 : vector<128x128xf32>
    %27 = arith.maximumf %24, %26 : vector<128x128xf32>
    %28 = vector.broadcast %5 : vector<1x128xf32> to vector<128x128xf32>
    %29 = arith.mulf %27, %28 : vector<128x128xf32>
    %30 = tpu.transpose %29, [1, 0] : vector<128x128xf32> -> vector<128x128xf32>
    %cst_14 = arith.constant dense<0.000000e+00> : vector<128xf32>
    %31 = vector.multi_reduction <add>, %30, %cst_14 [0] : vector<128x128xf32> to vector<128xf32>
    %32 = vector.shape_cast %31 : vector<128xf32> to vector<1x128xf32>
    %33 = vector.broadcast %6 : vector<1x1xf32> to vector<1x128xf32>
    %34 = arith.addf %32, %33 : vector<1x128xf32>
    %c0_15 = arith.constant 0 : index
    %c0_16 = arith.constant 0 : index
    %c0_17 = arith.constant 0 : index
    %35 = vector.load %arg5[%c0_15, %c0_16, %c0_17] : memref<1x1x128xf32, #tpu.memory_space<vmem>>, vector<1x1x128xf32>
    %36 = vector.shape_cast %35 : vector<1x1x128xf32> to vector<1x128xf32>
    %37 = vector.shape_cast %34 : vector<1x128xf32> to vector<1x1x128xf32>
    tpu.vector_store %arg5[%c0_15, %c0_16, %c0_17], %37 {strides = array<i32>} : memref<1x1x128xf32, #tpu.memory_space<vmem>>, vector<1x1x128xf32>,
    return
  }
  func.func @transform_0(%arg0: i32) -> (i32, i32) {
    %c0_i32 = arith.constant 0 : i32
    %c0_i32_0 = arith.constant 0 : i32
    return %arg0, %c0_i32 : i32, i32
  }
  func.func @transform_1(%arg0: i32) -> (i32, i32) {
    %c0_i32 = arith.constant 0 : i32
    %c0_i32_0 = arith.constant 0 : i32
    %c0_i32_1 = arith.constant 0 : i32
    return %c0_i32, %c0_i32_0 : i32, i32
  }
  func.func @transform_2(%arg0: i32) -> (i32, i32, i32) {
    %c0_i32 = arith.constant 0 : i32
    %c0_i32_0 = arith.constant 0 : i32
    %c0_i32_1 = arith.constant 0 : i32
    %c0_i32_2 = arith.constant 0 : i32
    return %c0_i32, %c0_i32_0, %c0_i32_1 : i32, i32, i32
  }
  func.func @transform_3(%arg0: i32) -> (i32, i32) {
    %c0_i32 = arith.constant 0 : i32
    %c0_i32_0 = arith.constant 0 : i32
    %c0_i32_1 = arith.constant 0 : i32
    return %c0_i32, %c0_i32_0 : i32, i32
  }
  func.func @transform_4(%arg0: i32) -> (i32, i32, i32) {
    %c0_i32 = arith.constant 0 : i32
    %c0_i32_0 = arith.constant 0 : i32
    %c0_i32_1 = arith.constant 0 : i32
    return %arg0, %c0_i32, %c0_i32_0 : i32, i32, i32
  }
}

</mosaic_0001>

<bundles_post_ra>
// kernel: critic_forward.1
= control target key start
LH: loop header
LB: loop body
LE: loop exit
PB: predicated region body
PF: predicated region fallthrough
CT: control target
= control target key end

     0   :  { %9 = vsyncpa [#allocation3], 0  ;;  %s910_s15 = smov [#allocation2]   ;;  %s1043_s0 = inlined_call_operand.vmem [shape: bf16[128,4], index: 0, kind: input, shape index: {}]   ;;  %s1044_s1 = inlined_call_operand.vmem [shape: bf16[4,128], index: 1, kind: input, shape index: {}]   ;;  %s1045_s2 = inlined_call_operand.hbm [shape: bf16[2,128,128], index: 2, kind: input, shape index: {}]   ;;  %s1046_s3 = inlined_call_operand.vmem [shape: f32[8,128], index: 3, kind: input, shape index: {}]   ;;  %s1047_s4 = inlined_call_operand.vmem [shape: f32[1,1,128], index: 4, kind: output, shape index: {}]  }
   0x1   :  { %s19_s16 = sshll.u32 %s910_s15, 4  ;;  %s886_s19 = scalar_lea.hbm %s1045_s2, 2048  ;;  %s20_s16 = int_to_ptr.vmem [resolvable:$true] %s19_s16 }
   0x2   :  { %p887_p0 = scmp.ne.s32.totalorder %s1045_s2, %s886_s19  ;;  %p890_p1 = scmp.lt.u32.totalorder %s886_s19, %s1045_s2 }
   0x4   :  { %p892_p2 = pnand %p890_p1, %p887_p0 }
   0x6   :  { %895 = shalt.err (!%p892_p2)
}
   0x7   :  { %s896_s24 = scalar_lea.vmem %s20_s16, 2048  ;;  %p901_p4 = scmp.lt.s32.totalorder %s20_s16, %s20_s16 }
   0x8   :  { %p897_p3 = scmp.ne.s32.totalorder %s20_s16, %s896_s24  ;;  %p902_p5 = scmp.lt.s32.totalorder %s896_s24, %s896_s24 }
   0xa   :  { %p903_p6 = por %p902_p5, %p901_p4 }
   0xc   :  { %p904_p7 = pnand %p903_p6, %p897_p3 }
   0xe   :  { %907 = shalt.err (!%p904_p7)
}
   0xf   :  { %s911_s25 = smov 64   ;;  %s912_s26 = smov 4  }
  0x10   :  { %25 = dma.hbm_to_vmem [thread:$0]  %s1045_s2, 2048, %s20_s16, [#allocation3], %s911_s25, %s911_s25, %s912_s26  }
  0x11   :  { %908 = dma.done.wait [#allocation3], 2048  }
  0x12   :  { %909 = vsyncadd [#allocation3], 4294965248  ;;  %vm119_vm0 = vcmask 1041408   ;;  %vm94_vm1 = vcmask 31744   ;;  %v49_v0 = vld [vmem:[%s1044_s1] sm:$0x3]  ;;  %v50_v24 = vlaneseq }
  0x13   :  { %855 = vmatprep.subr.msk.bf16.mxu0 %vm119_vm0, %v49_v0  ;;  %v121_v1 = vsel %vm119_vm0, %v49_v0, 0  ;;  %v862_v2 = vld [vmem:[%s1043_s0] sm:$0xff]   ;;  %v863_v3 = vld [vmem:[%s1043_s0 + $0x8] sm:$0xff]   ;;  %v864_v4 = vld [vmem:[%s1043_s0 + $0x10] sm:$0xff]  }
  0x14   :  { %774 = vmatpush3.bf16.msra.mxu0 %v121_v1  ;;  %775 = vmatprep.mubr.msk.bf16.mxu0 %vm94_vm1, %v862_v2  ;;  %v865_v5 = vld [vmem:[%s1043_s0 + $0x18] sm:$0xff]   ;;  %v866_v6 = vld [vmem:[%s1043_s0 + $0x20] sm:$0xff]   ;;  %v871_v8 = vld [vmem:[#allocation2 + $0x8] sm:$0xff]   ;;  %v986_v25 = vshrl.u32 %v50_v24, 7 }
  0x15   :  { %v870_v7 = vld [vmem:[#allocation2] sm:$0xff]   ;;  %v872_v9 = vld [vmem:[#allocation2 + $0x10] sm:$0xff]   ;;  %v867_v10 = vld [vmem:[%s1043_s0 + $0x28] sm:$0xff]  }
  0x16   :  { %791 = vmatprep.subr.bf16.mxu1 %v870_v7  ;;  %v873_v11 = vld [vmem:[#allocation2 + $0x18] sm:$0xff]   ;;  %v868_v12 = vld [vmem:[%s1043_s0 + $0x30] sm:$0xff]   ;;  %v874_v13 = vld [vmem:[#allocation2 + $0x20] sm:$0xff]   ;;  %v52_v26 = vsub.s32 0, %v986_v25 }
  0x17   :  { %776 = vmatmul.mubr.msk.bf16.vlgmr.msra.gmra.mrb[0].mxu0 %vm94_vm1, %v863_v3  ;;  %792 = vmatpush3.bf16.msra.mxu1 %v870_v7  ;;  %v869_v14 = vld [vmem:[%s1043_s0 + $0x38] sm:$0xff]   ;;  %v875_v15 = vld [vmem:[#allocation2 + $0x28] sm:$0xff]   ;;  %v876_v16 = vld [vmem:[#allocation2 + $0x30] sm:$0xff]   ;;  %v246_v7 = vsub.s32 1, %v986_v25 }
  0x18   :  { %779 = vmatprep.mubr.msk.bf16.mxu0 %vm94_vm1, %v864_v4  ;;  %793 = vmatprep.subr.bf16.mxu1 %v871_v8  ;;  %v877_v17 = vld [vmem:[#allocation2 + $0x38] sm:$0xff]   ;;  %v878_v18 = vld [vmem:[#allocation2 + $0x40] sm:$0xff]   ;;  %v879_v19 = vld [vmem:[#allocation2 + $0x48] sm:$0xff]  }
  0x19   :  { %823 = vmatprep.subr.bf16.mxu0 %v878_v18  ;;  %v880_v20 = vld [vmem:[#allocation2 + $0x50] sm:$0xff]   ;;  %v881_v21 = vld [vmem:[#allocation2 + $0x58] sm:$0xff]   ;;  %v882_v22 = vld [vmem:[#allocation2 + $0x60] sm:$0xff]  }
  0x1a   :  { %824 = vmatpush3.bf16.msra.mxu0 %v878_v18  ;;  %v883_v23 = vld [vmem:[#allocation2 + $0x68] sm:$0xff]   ;;  %v992_v27 = vld [vmem:[%s1046_s3] sm:$0xff] }
  0x1b   :  { %794 = vmatpush3.bf16.msra.mxu1 %v871_v8  ;;  %825 = vmatprep.subr.bf16.mxu0 %v879_v19  ;;  %v53_v28 = vrot.slane %v992_v27, %v52_v26  ;;  %v247_v8 = vrot.slane %v992_v27, %v246_v7  ;;  %v617_v7 = vsub.s32 3, %v986_v25 }
  0x1c   :  { %795 = vmatprep.subr.bf16.mxu1 %v872_v9 }
  0x1e   :  { %826 = vmatpush3.bf16.msra.mxu0 %v879_v19 }
  0x1f   :  { %780 = vmatmul.mubr.msk.bf16.gmra.mrb[4].mxu0 %vm94_vm1, %v865_v5  ;;  %796 = vmatpush3.bf16.msra.mxu1 %v872_v9  ;;  %v884_v5 = vld [vmem:[#allocation2 + $0x70] sm:$0xff]  }
  0x20   :  { %783 = vmatprep.mubr.msk.bf16.mxu0 %vm94_vm1, %v866_v6  ;;  %797 = vmatprep.subr.bf16.mxu1 %v873_v11  ;;  %v885_v6 = vld [vmem:[#allocation2 + $0x78] sm:$0xff]  }
  0x21   :  { %827 = vmatprep.subr.bf16.mxu0 %v880_v20 }
  0x22   :  { %828 = vmatpush3.bf16.msra.mxu0 %v880_v20 }
  0x23   :  { %798 = vmatpush3.bf16.msra.mxu1 %v873_v11  ;;  %829 = vmatprep.subr.bf16.mxu0 %v881_v21 }
  0x24   :  { %799 = vmatprep.subr.bf16.mxu1 %v874_v13 }
  0x26   :  { %830 = vmatpush3.bf16.msra.mxu0 %v881_v21 }
  0x27   :  { %784 = vmatmul.mubr.msk.bf16.gmra.mrb[8].mxu0 %vm94_vm1, %v867_v10  ;;  %800 = vmatpush3.bf16.msra.mxu1 %v874_v13 }
  0x28   :  { %787 = vmatprep.mubr.msk.bf16.mxu0 %vm94_vm1, %v868_v12  ;;  %801 = vmatprep.subr.bf16.mxu1 %v875_v15 }
  0x29   :  { %831 = vmatprep.subr.bf16.mxu0 %v882_v22 }
  0x2a   :  { %832 = vmatpush3.bf16.msra.mxu0 %v882_v22 }
  0x2b   :  { %802 = vmatpush3.bf16.msra.mxu1 %v875_v15  ;;  %833 = vmatprep.subr.bf16.mxu0 %v883_v23 }
  0x2c   :  { %803 = vmatprep.subr.bf16.mxu1 %v876_v16 }
  0x2e   :  { %834 = vmatpush3.bf16.msra.mxu0 %v883_v23 }
  0x2f   :  { %788 = vmatmul.mubr.msk.bf16.gmra.mrb[12].mxu0 %vm94_vm1, %v869_v14  ;;  %804 = vmatpush3.bf16.msra.mxu1 %v876_v16 }
  0x30   :  { %805 = vmatprep.subr.bf16.mxu1 %v877_v17  ;;  %835 = vmatprep.subr.bf16.mxu0 %v884_v5 }
  0x32   :  { %836 = vmatpush3.bf16.msra.mxu0 %v884_v5 }
  0x33   :  { %806 = vmatpush3.bf16.msra.mxu1 %v877_v17  ;;  %837 = vmatprep.subr.bf16.mxu0 %v885_v6 }
  0x36   :  { %838 = vmatpush3.bf16.msra.mxu0 %v885_v6 }
  0xea   :  { %v777_v29 = vpop.f32.mrb[0].mxu0 }
  0xeb   :  { %v157_v30 = vpop.f32.mrb[1].mxu0  ;;  %v166_v32 = vadd.f32 %v777_v29, %v53_v28 }
  0xec   :  { %v778_v31 = vpop.f32.mrb[2].mxu0  ;;  %v158_v35 = vadd.f32 %v157_v30, %v53_v28 }
  0xed   :  { %v169_v33 = vadd.f32 %v778_v31, %v53_v28  ;;  %v160_v34 = vpop.f32.mrb[3].mxu0 }
  0xee   :  { %v161_v36 = vadd.f32 %v160_v34, %v53_v28 }
  0xef   :  { %v221_v37 = vpack.c.bf16 %v169_v33, %v166_v32 }
  0xf0   :  { %v220_v38 = vpack.c.bf16 %v161_v36, %v158_v35 }
  0xf2   :  { %v781_v39 = vpop.f32.mrb[4].mxu0  ;;  %807 = vmatprep.mubr.bf16.mxu1 %v220_v38 }
  0xf3   :  { %v182_v40 = vadd.f32 %v781_v39, %v53_v28  ;;  %v173_v41 = vpop.f32.mrb[5].mxu0  ;;  %808 = vmatmul.mubr.bf16.vlgmr.msra.gmra.mrb[0].mxu1 %v221_v37 }
  0xf4   :  { %v174_v42 = vadd.f32 %v173_v41, %v53_v28  ;;  %v782_v43 = vpop.f32.mrb[6].mxu0 }
  0xf5   :  { %v185_v44 = vadd.f32 %v782_v43, %v53_v28  ;;  %v176_v45 = vpop.f32.mrb[7].mxu0 }
  0xf6   :  { %v177_v46 = vadd.f32 %v176_v45, %v53_v28 }
  0xf7   :  { %v223_v47 = vpack.c.bf16 %v185_v44, %v182_v40 }
  0xf8   :  { %v222_v48 = vpack.c.bf16 %v177_v46, %v174_v42 }
  0xfa   :  { %811 = vmatprep.mubr.bf16.mxu1 %v222_v48  ;;  %v785_v49 = vpop.f32.mrb[8].mxu0 }
  0xfb   :  { %812 = vmatmul.mubr.bf16.gmra.mrb[4].mxu1 %v223_v47  ;;  %v198_v50 = vadd.f32 %v785_v49, %v53_v28  ;;  %v189_v51 = vpop.f32.mrb[9].mxu0 }
  0xfc   :  { %v190_v52 = vadd.f32 %v189_v51, %v53_v28  ;;  %v786_v53 = vpop.f32.mrb[10].mxu0 }
  0xfd   :  { %v201_v54 = vadd.f32 %v786_v53, %v53_v28  ;;  %v192_v55 = vpop.f32.mrb[11].mxu0 }
  0xfe   :  { %v193_v56 = vadd.f32 %v192_v55, %v53_v28 }
  0xff   :  { %v225_v57 = vpack.c.bf16 %v201_v54, %v198_v50 }
 0x100   :  { %v224_v58 = vpack.c.bf16 %v193_v56, %v190_v52 }
 0x102   :  { %815 = vmatprep.mubr.bf16.mxu1 %v224_v58  ;;  %v789_v59 = vpop.f32.mrb[12].mxu0 }
 0x103   :  { %816 = vmatmul.mubr.bf16.gmra.mrb[8].mxu1 %v225_v57  ;;  %v214_v60 = vadd.f32 %v789_v59, %v53_v28  ;;  %v205_v61 = vpop.f32.mrb[13].mxu0 }
 0x104   :  { %v206_v62 = vadd.f32 %v205_v61, %v53_v28  ;;  %v790_v63 = vpop.f32.mrb[14].mxu0 }
 0x105   :  { %v217_v0 = vadd.f32 %v790_v63, %v53_v28  ;;  %v208_v1 = vpop.f32.mrb[15].mxu0 }
 0x106   :  { %v209_v2 = vadd.f32 %v208_v1, %v53_v28 }
 0x107   :  { %v227_v3 = vpack.c.bf16 %v217_v0, %v214_v60 }
 0x108   :  { %v226_v4 = vpack.c.bf16 %v209_v2, %v206_v62 }
 0x10a   :  { %819 = vmatprep.mubr.bf16.mxu1 %v226_v4  ;;  %v436_v4 = vsub.s32 2, %v986_v25 }
 0x10b   :  { %820 = vmatmul.mubr.bf16.gmra.mrb[12].mxu1 %v227_v3  ;;  %v913_v3 = vmov 0  }
 0x10c   :  { %860 = vset.pattern.permute.xlu1 %v913_v3  ;;  %v1001_v5 = vrot.slane %v992_v27, %v436_v4 }
 0x10d   :  { %690 = vperm.xlu1 %860, %v992_v27  }
 0x1c6   :  { %v809_v9 = vpop.f32.mrb[0].mxu1 }
 0x1c7   :  { %v339_v10 = vadd.f32 %v809_v9, %v247_v8  ;;  %v330_v11 = vpop.f32.mrb[1].mxu1 }
 0x1c8   :  { %v331_v12 = vadd.f32 %v330_v11, %v247_v8  ;;  %v810_v13 = vpop.f32.mrb[2].mxu1 }
 0x1c9   :  { %v342_v14 = vadd.f32 %v810_v13, %v247_v8  ;;  %v333_v15 = vpop.f32.mrb[3].mxu1  ;;  %v395_v17 = vmax.f32 %v339_v10, 0.0 }
 0x1ca   :  { %v334_v16 = vadd.f32 %v333_v15, %v247_v8  ;;  %v393_v19 = vmax.f32 %v331_v12, 0.0  ;;  %v1008_v15 = vrot.slane %v992_v27, %v617_v7 }
 0x1cb   :  { %v396_v18 = vmax.f32 %v342_v14, 0.0 }
 0x1cc   :  { %v394_v20 = vmax.f32 %v334_v16, 0.0 }
 0x1cd   :  { %v410_v21 = vpack.c.bf16 %v396_v18, %v395_v17 }
 0x1ce   :  { %v409_v22 = vpack.c.bf16 %v394_v20, %v393_v19  ;;  %v813_v23 = vpop.f32.mrb[4].mxu1 }
 0x1cf   :  { %v355_v24 = vadd.f32 %v813_v23, %v247_v8  ;;  %v346_v26 = vpop.f32.mrb[5].mxu1 }
 0x1d0   :  { %v347_v28 = vadd.f32 %v346_v26, %v247_v8  ;;  %v814_v29 = vpop.f32.mrb[6].mxu1  ;;  %839 = vmatprep.mubr.bf16.mxu0 %v409_v22 }
 0x1d1   :  { %v399_v30 = vmax.f32 %v355_v24, 0.0  ;;  %v358_v31 = vadd.f32 %v814_v29, %v247_v8  ;;  %v349_v32 = vpop.f32.mrb[7].mxu1  ;;  %840 = vmatmul.mubr.bf16.vlgmr.msra.gmra.mrb[16].mxu0 %v410_v21 }
 0x1d2   :  { %v397_v33 = vmax.f32 %v347_v28, 0.0  ;;  %v350_v34 = vadd.f32 %v349_v32, %v247_v8 }
 0x1d3   :  { %v400_v35 = vmax.f32 %v358_v31, 0.0 }
 0x1d4   :  { %v398_v36 = vmax.f32 %v350_v34, 0.0 }
 0x1d5   :  { %v412_v37 = vpack.c.bf16 %v400_v35, %v399_v30 }
 0x1d6   :  { %v411_v38 = vpack.c.bf16 %v398_v36, %v397_v33  ;;  %v817_v39 = vpop.f32.mrb[8].mxu1 }
 0x1d7   :  { %v371_v40 = vadd.f32 %v817_v39, %v247_v8  ;;  %v362_v41 = vpop.f32.mrb[9].mxu1 }
 0x1d8   :  { %843 = vmatprep.mubr.bf16.mxu0 %v411_v38  ;;  %v363_v42 = vadd.f32 %v362_v41, %v247_v8  ;;  %v818_v43 = vpop.f32.mrb[10].mxu1 }
 0x1d9   :  { %v403_v44 = vmax.f32 %v371_v40, 0.0  ;;  %844 = vmatmul.mubr.bf16.gmra.mrb[20].mxu0 %v412_v37  ;;  %v374_v45 = vadd.f32 %v818_v43, %v247_v8  ;;  %v365_v46 = vpop.f32.mrb[11].mxu1 }
 0x1da   :  { %v401_v47 = vmax.f32 %v363_v42, 0.0  ;;  %v366_v48 = vadd.f32 %v365_v46, %v247_v8 }
 0x1db   :  { %v404_v49 = vmax.f32 %v374_v45, 0.0 }
 0x1dc   :  { %v402_v50 = vmax.f32 %v366_v48, 0.0 }
 0x1dd   :  { %v414_v51 = vpack.c.bf16 %v404_v49, %v403_v44 }
 0x1de   :  { %v413_v52 = vpack.c.bf16 %v402_v50, %v401_v47  ;;  %v821_v53 = vpop.f32.mrb[12].mxu1 }
 0x1df   :  { %v387_v54 = vadd.f32 %v821_v53, %v247_v8  ;;  %v378_v55 = vpop.f32.mrb[13].mxu1 }
 0x1e0   :  { %847 = vmatprep.mubr.bf16.mxu0 %v413_v52  ;;  %v379_v56 = vadd.f32 %v378_v55, %v247_v8  ;;  %v822_v57 = vpop.f32.mrb[14].mxu1 }
 0x1e1   :  { %848 = vmatmul.mubr.bf16.gmra.mrb[24].mxu0 %v414_v51  ;;  %v407_v58 = vmax.f32 %v387_v54, 0.0  ;;  %v390_v59 = vadd.f32 %v822_v57, %v247_v8  ;;  %v381_v60 = vpop.f32.mrb[15].mxu1 }
 0x1e2   :  { %v405_v61 = vmax.f32 %v379_v56, 0.0  ;;  %v382_v62 = vadd.f32 %v381_v60, %v247_v8 }
 0x1e3   :  { %v408_v63 = vmax.f32 %v390_v59, 0.0 }
 0x1e4   :  { %v406_v0 = vmax.f32 %v382_v62, 0.0 }
 0x1e5   :  { %v416_v1 = vpack.c.bf16 %v408_v63, %v407_v58 }
 0x1e6   :  { %v415_v2 = vpack.c.bf16 %v406_v0, %v405_v61 }
 0x1e8   :  { %851 = vmatprep.mubr.bf16.mxu0 %v415_v2 }
 0x1e9   :  { %852 = vmatmul.mubr.bf16.gmra.mrb[28].mxu0 %v416_v1 }
 0x2a4   :  { %v841_v6 = vpop.f32.mrb[16].mxu0 }
 0x2a5   :  { %v520_v8 = vpop.f32.mrb[17].mxu0  ;;  %v529_v12 = vadd.f32 %v841_v6, %v1001_v5 }
 0x2a6   :  { %v521_v9 = vadd.f32 %v520_v8, %v1001_v5  ;;  %v842_v10 = vpop.f32.mrb[18].mxu0 }
 0x2a7   :  { %v523_v11 = vpop.f32.mrb[19].mxu0  ;;  %v585_v18 = vmul.f32 0.01, %v529_v12  ;;  %v532_v19 = vadd.f32 %v842_v10, %v1001_v5 }
 0x2a8   :  { %v583_v13 = vmul.f32 0.01, %v521_v9  ;;  %v524_v14 = vadd.f32 %v523_v11, %v1001_v5 }
 0x2a9   :  { %v601_v26 = vmax.f32 %v529_v12, %v585_v18  ;;  %v586_v28 = vmul.f32 0.01, %v532_v19 }
 0x2aa   :  { %v584_v16 = vmul.f32 0.01, %v524_v14  ;;  %v599_v17 = vmax.f32 %v521_v9, %v583_v13 }
 0x2ab   :  { %v602_v30 = vmax.f32 %v532_v19, %v586_v28  ;;  %v621_v33 = vmul.f32 %v1008_v15, %v601_v26 }
 0x2ac   :  { %v600_v20 = vmax.f32 %v524_v14, %v584_v16  ;;  %v845_v25 = vpop.f32.mrb[20].mxu0  ;;  %v619_v21 = vmul.f32 %v1008_v15, %v599_v17 }
 0x2ad   :  { %v536_v22 = vpop.f32.mrb[21].mxu0  ;;  %v545_v38 = vadd.f32 %v845_v25, %v1001_v5  ;;  %v622_v41 = vmul.f32 %v1008_v15, %v602_v30 }
 0x2ae   :  { %v846_v23 = vpop.f32.mrb[22].mxu0  ;;  %635 = vxpose.xlu0.b32.start [1/16] %v619_v21, 128  ;;  %v537_v29 = vadd.f32 %v536_v22, %v1001_v5  ;;  %v620_v27 = vmul.f32 %v1008_v15, %v600_v20 }
 0x2af   :  { %v539_v24 = vpop.f32.mrb[23].mxu0  ;;  %v589_v42 = vmul.f32 0.01, %v545_v38  ;;  %v548_v43 = vadd.f32 %v846_v23, %v1001_v5 }
 0x2b0   :  { %v587_v31 = vmul.f32 0.01, %v537_v29  ;;  %v540_v32 = vadd.f32 %v539_v24, %v1001_v5 }
 0x2b1   :  { %v605_v50 = vmax.f32 %v545_v38, %v589_v42  ;;  %v590_v51 = vmul.f32 0.01, %v548_v43 }
 0x2b2   :  { %636 = vxpose.xlu0.b32.cont [2/16] %v620_v27, 128  ;;  %v603_v39 = vmax.f32 %v537_v29, %v587_v31  ;;  %v588_v40 = vmul.f32 0.01, %v540_v32 }
 0x2b3   :  { %v606_v54 = vmax.f32 %v548_v43, %v590_v51  ;;  %v625_v57 = vmul.f32 %v1008_v15, %v605_v50 }
 0x2b4   :  { %v849_v34 = vpop.f32.mrb[24].mxu0  ;;  %v604_v44 = vmax.f32 %v540_v32, %v588_v40  ;;  %v623_v45 = vmul.f32 %v1008_v15, %v603_v39 }
 0x2b5   :  { %v552_v35 = vpop.f32.mrb[25].mxu0  ;;  %v561_v58 = vadd.f32 %v849_v34, %v1001_v5  ;;  %v626_v61 = vmul.f32 %v1008_v15, %v606_v54 }
 0x2b6   :  { %637 = vxpose.xlu0.b32.cont [3/16] %v621_v33, 128  ;;  %v850_v36 = vpop.f32.mrb[26].mxu0  ;;  %v553_v52 = vadd.f32 %v552_v35, %v1001_v5  ;;  %v624_v53 = vmul.f32 %v1008_v15, %v604_v44 }
 0x2b7   :  { %v555_v37 = vpop.f32.mrb[27].mxu0  ;;  %v593_v62 = vmul.f32 0.01, %v561_v58  ;;  %v564_v63 = vadd.f32 %v850_v36, %v1001_v5 }
 0x2b8   :  { %v591_v55 = vmul.f32 0.01, %v553_v52  ;;  %v556_v56 = vadd.f32 %v555_v37, %v1001_v5 }
 0x2b9   :  { %v609_v2 = vmax.f32 %v561_v58, %v593_v62  ;;  %v594_v4 = vmul.f32 0.01, %v564_v63 }
 0x2ba   :  { %638 = vxpose.xlu0.b32.cont [4/16] %v622_v41, 128  ;;  %v607_v59 = vmax.f32 %v553_v52, %v591_v55  ;;  %v592_v60 = vmul.f32 0.01, %v556_v56 }
 0x2bb   :  { %v610_v8 = vmax.f32 %v564_v63, %v594_v4  ;;  %v629_v11 = vmul.f32 %v1008_v15, %v609_v2 }
 0x2bc   :  { %v853_v46 = vpop.f32.mrb[28].mxu0  ;;  %v608_v0 = vmax.f32 %v556_v56, %v592_v60  ;;  %v627_v1 = vmul.f32 %v1008_v15, %v607_v59  ;;  %v691_v60 = vpop.permute.xlu1 %690 }
 0x2bd   :  { %v568_v47 = vpop.f32.mrb[29].mxu0  ;;  %v577_v12 = vadd.f32 %v853_v46, %v1001_v5  ;;  %v630_v16 = vmul.f32 %v1008_v15, %v610_v8 }
 0x2be   :  { %639 = vxpose.xlu0.b32.cont [5/16] %v623_v45, 128  ;;  %v854_v48 = vpop.f32.mrb[30].mxu0  ;;  %v569_v6 = vadd.f32 %v568_v47, %v1001_v5  ;;  %v628_v7 = vmul.f32 %v1008_v15, %v608_v0 }
 0x2bf   :  { %v571_v49 = vpop.f32.mrb[31].mxu0  ;;  %v597_v17 = vmul.f32 0.01, %v577_v12  ;;  %v580_v18 = vadd.f32 %v854_v48, %v1001_v5 }
 0x2c0   :  { %v595_v9 = vmul.f32 0.01, %v569_v6  ;;  %v572_v10 = vadd.f32 %v571_v49, %v1001_v5 }
 0x2c1   :  { %v613_v25 = vmax.f32 %v577_v12, %v597_v17  ;;  %v598_v21 = vmul.f32 0.01, %v580_v18 }
 0x2c2   :  { %640 = vxpose.xlu0.b32.cont [6/16] %v624_v53, 128  ;;  %v611_v13 = vmax.f32 %v569_v6, %v595_v9  ;;  %v596_v14 = vmul.f32 0.01, %v572_v10 }
 0x2c3   :  { %v614_v23 = vmax.f32 %v580_v18, %v598_v21  ;;  %v633_v24 = vmul.f32 %v1008_v15, %v613_v25 }
 0x2c4   :  { %v612_v19 = vmax.f32 %v572_v10, %v596_v14  ;;  %v631_v20 = vmul.f32 %v1008_v15, %v611_v13 }
 0x2c5   :  { %v634_v26 = vmul.f32 %v1008_v15, %v614_v23 }
 0x2c6   :  { %641 = vxpose.xlu0.b32.cont [7/16] %v625_v57, 128  ;;  %v632_v22 = vmul.f32 %v1008_v15, %v612_v19 }
 0x2ca   :  { %642 = vxpose.xlu0.b32.cont [8/16] %v626_v61, 128 }
 0x2ce   :  { %643 = vxpose.xlu0.b32.cont [9/16] %v627_v1, 128 }
 0x2d2   :  { %644 = vxpose.xlu0.b32.cont [10/16] %v628_v7, 128 }
 0x2d6   :  { %645 = vxpose.xlu0.b32.cont [11/16] %v629_v11, 128 }
 0x2da   :  { %646 = vxpose.xlu0.b32.cont [12/16] %v630_v16, 128 }
 0x2de   :  { %647 = vxpose.xlu0.b32.cont [13/16] %v631_v20, 128 }
 0x2e2   :  { %648 = vxpose.xlu0.b32.cont [14/16] %v632_v22, 128 }
 0x2e6   :  { %649 = vxpose.xlu0.b32.cont [15/16] %v633_v24, 128 }
 0x2ea   :  { %650 = vxpose.xlu0.b32.end [16/16] %v634_v26, 128 }
 0x313   :  { %861 = vset.pattern.permute.xlu0 %v913_v3 }
 0x32e   :  { %v651_v28 = vpop.trf.xlu0 }
 0x332   :  { %v652_v5 = vpop.trf.xlu0 }
 0x333   :  { %v667_v35 = vadd.f32 %v652_v5, %v651_v28 }
 0x336   :  { %v653_v29 = vpop.trf.xlu0 }
 0x337   :  { %v668_v36 = vadd.f32 %v667_v35, %v653_v29 }
 0x33a   :  { %v654_v27 = vpop.trf.xlu0 }
 0x33b   :  { %v669_v38 = vadd.f32 %v668_v36, %v654_v27 }
 0x33e   :  { %v655_v30 = vpop.trf.xlu0 }
 0x33f   :  { %v670_v39 = vadd.f32 %v669_v38, %v655_v30 }
 0x342   :  { %v656_v31 = vpop.trf.xlu0 }
 0x343   :  { %v671_v41 = vadd.f32 %v670_v39, %v656_v31 }
 0x346   :  { %v657_v32 = vpop.trf.xlu0 }
 0x347   :  { %v672_v15 = vadd.f32 %v671_v41, %v657_v32 }
 0x34a   :  { %v658_v33 = vpop.trf.xlu0 }
 0x34b   :  { %v673_v43 = vadd.f32 %v672_v15, %v658_v33 }
 0x34e   :  { %v659_v34 = vpop.trf.xlu0 }
 0x34f   :  { %v674_v3 = vadd.f32 %v673_v43, %v659_v34 }
 0x352   :  { %v660_v37 = vpop.trf.xlu0 }
 0x353   :  { %v675_v45 = vadd.f32 %v674_v3, %v660_v37 }
 0x356   :  { %v661_v40 = vpop.trf.xlu0 }
 0x357   :  { %v676_v46 = vadd.f32 %v675_v45, %v661_v40 }
 0x35a   :  { %v662_v42 = vpop.trf.xlu0 }
 0x35b   :  { %v677_v48 = vadd.f32 %v676_v46, %v662_v42 }
 0x35e   :  { %v663_v44 = vpop.trf.xlu0 }
 0x35f   :  { %v678_v49 = vadd.f32 %v677_v48, %v663_v44 }
 0x362   :  { %v664_v47 = vpop.trf.xlu0 }
 0x363   :  { %v679_v51 = vadd.f32 %v678_v49, %v664_v47 }
 0x366   :  { %v665_v50 = vpop.trf.xlu0 }
 0x367   :  { %v680_v52 = vadd.f32 %v679_v51, %v665_v50 }
 0x36a   :  { %v666_v53 = vpop.trf.xlu0 }
 0x36b   :  { %v681_v54 = vadd.f32 %v680_v52, %v666_v53 }
 0x36d   :  { %v682_v55 = vrot.slane %v681_v54, 4 }
 0x36f   :  { %v683_v56 = vadd.f32 %v682_v55, %v681_v54 }
 0x371   :  { %v684_v57 = vrot.slane %v683_v56, 2 }
 0x373   :  { %v685_v58 = vadd.f32 %v684_v57, %v683_v56 }
 0x375   :  { %v686_v59 = vrot.slane %v685_v58, 1 }
 0x377   :  { %v687_v61 = vadd.f32 %v686_v59, %v685_v58 }
 0x379   :  { %v693_v62 = vadd.f32 %v691_v60, %v687_v61 }
 0x37b   :  { %694 = vst [vmem:[%s1047_s4 - $0x4] sm:$0x10] %v693_v62 }
 0x37c   :  { %699 = vsyncpa [#allocation3], 1 }

</bundles_post_ra>
